<compile_context>
chip_gen: v5e
topology: v5e:2x2
jax: 0.10.0
libtpu: 0.0.40
codegen_flags: <defaults>
</compile_context>

<pallas_src>
import functools

import jax
import jax.numpy as jnp
from jax import lax
from jax.experimental import pallas as pl
from jax.experimental.pallas import tpu as pltpu

_SQRT1_2 = 0.7071067811865476
_MXU_ROW_TILE = 256   # good for v6e/v7x 256-wide MXU; harmless on v5e
_VPU_ROW_TILE = 512


def _pick_tile(rows, cap=_MXU_ROW_TILE):
    """Largest multiple-of-8 divisor of `rows` <= cap; fallback: rows (full block)."""
    best = 0
    for t in range(8, min(rows, cap) + 1, 8):
        if rows % t == 0:
            best = t
    return best if best else rows


def _pick_dw_tile(h, cap=32):
    """H-tile for the depthwise conv (needs >=3 rows so the halo stays in-bounds)."""
    if h <= cap:
        return h
    best = 1
    for t in range(cap, 0, -1):
        if h % t == 0:
            best = t
            break
    return best if best >= 3 else h


# --------------------------------------------------------------------------
# stem: Conv2d(k4,s4) as patch matmul, fused with channels_first LayerNorm epilogue
# --------------------------------------------------------------------------
def _stem_kernel(p_ref, w_ref, b_ref, g_ref, be_ref, o_ref, *, eps):
    x = p_ref[...].astype(jnp.bfloat16)                       # (tr, K)
    acc = jnp.dot(x, w_ref[...], preferred_element_type=jnp.float32) + b_ref[...]
    mu = jnp.mean(acc, axis=-1, keepdims=True)
    xc = acc - mu
    var = jnp.mean(xc * xc, axis=-1, keepdims=True)
    y = xc * lax.rsqrt(var + eps)
    o_ref[...] = (y * g_ref[...] + be_ref[...]).astype(o_ref.dtype)


def stem_conv_ln(rows, w, b, g, beta, eps=1e-6):
    R, K = rows.shape
    cout = w.shape[1]
    tr = _pick_tile(R, _MXU_ROW_TILE)
    return pl.pallas_call(
        functools.partial(_stem_kernel, eps=eps),
        out_shape=jax.ShapeDtypeStruct((R, cout), jnp.float32),
        grid=(R // tr,),
        in_specs=[pl.BlockSpec((tr, K), lambda i: (i, 0)),
                  pl.BlockSpec((K, cout), lambda i: (0, 0)),
                  pl.BlockSpec((1, cout), lambda i: (0, 0)),
                  pl.BlockSpec((1, cout), lambda i: (0, 0)),
                  pl.BlockSpec((1, cout), lambda i: (0, 0))],
        out_specs=pl.BlockSpec((tr, cout), lambda i: (i, 0)),
        compiler_params=pltpu.CompilerParams(dimension_semantics=("parallel",)),
    )(rows, w, b, g, beta)


# --------------------------------------------------------------------------
# downsample 1..3: channels_first LayerNorm prologue fused with Conv2d(k2,s2)
# patches are position-major (4, rows, C) so each patch position is a clean 2-D slab.
# --------------------------------------------------------------------------
def _down_kernel(p_ref, lnw_ref, lnb_ref, w_ref, b_ref, o_ref, *, eps):
    tr, cout = o_ref.shape
    acc = jnp.broadcast_to(b_ref[...], (tr, cout)).astype(jnp.float32)
    for p in range(p_ref.shape[0]):
        xp = p_ref[p].astype(jnp.float32)                      # (tr, C)
        mu = jnp.mean(xp, axis=-1, keepdims=True)
        xc = xp - mu
        var = jnp.mean(xc * xc, axis=-1, keepdims=True)
        xn = xc * lax.rsqrt(var + eps) * lnw_ref[...] + lnb_ref[...]
        acc = acc + jnp.dot(xn.astype(jnp.bfloat16), w_ref[p],
                            preferred_element_type=jnp.float32)
    o_ref[...] = acc.astype(o_ref.dtype)


def ln_downconv(patches, lnw, lnb, w, b, eps=1e-6):
    P, R, C = patches.shape
    cout = w.shape[-1]
    tr = _pick_tile(R, _MXU_ROW_TILE)
    return pl.pallas_call(
        functools.partial(_down_kernel, eps=eps),
        out_shape=jax.ShapeDtypeStruct((R, cout), jnp.float32),
        grid=(R // tr,),
        in_specs=[pl.BlockSpec((P, tr, C), lambda i: (0, i, 0)),
                  pl.BlockSpec((1, C), lambda i: (0, 0)),
                  pl.BlockSpec((1, C), lambda i: (0, 0)),
                  pl.BlockSpec((P, C, cout), lambda i: (0, 0, 0)),
                  pl.BlockSpec((1, cout), lambda i: (0, 0))],
        out_specs=pl.BlockSpec((tr, cout), lambda i: (i, 0)),
        compiler_params=pltpu.CompilerParams(dimension_semantics=("parallel",)),
    )(patches, lnw, lnb, w, b)


# --------------------------------------------------------------------------
# depthwise 7x7 conv, tiled over (batch, H-tiles) with a manual halo DMA.
# Borders are handled in-kernel (no host-side jnp.pad of the activation); the
# DMA is issued first so the border zero-fill / bias-init overlap it.
# --------------------------------------------------------------------------
def _dwconv_kernel(x_hbm, w_ref, b_ref, o_ref, xin, xbuf, sem, *, th, H, W, n_tiles):
    n = pl.program_id(0)
    i = pl.program_id(1)
    C = xbuf.shape[-1]

    # DMA descriptors for the valid input rows of this tile (the 3-row top/bottom halo
    # is clamped at the image border).  Rebuilt identically for start and for wait.
    def cp_single():
        return pltpu.make_async_copy(x_hbm.at[n], xin.at[pl.ds(3, H)], sem)

    def cp_first():
        return pltpu.make_async_copy(x_hbm.at[n, pl.ds(0, th + 3)],
                                     xin.at[pl.ds(3, th + 3)], sem)

    def cp_mid():
        return pltpu.make_async_copy(x_hbm.at[n, pl.ds(i * th - 3, th + 6)],
                                     xin.at[pl.ds(0, th + 6)], sem)

    def cp_last():
        return pltpu.make_async_copy(x_hbm.at[n, pl.ds(i * th - 3, th + 3)],
                                     xin.at[pl.ds(0, th + 3)], sem)

    # ---- 1) start the halo DMA first so the VPU setup work below overlaps it ----
    if n_tiles == 1:
        cp_single().start()
    else:
        @pl.when(i == 0)
        def _():
            cp_first().start()

        @pl.when(jnp.logical_and(i > 0, i < n_tiles - 1))
        def _():
            cp_mid().start()

        @pl.when(i == n_tiles - 1)
        def _():
            cp_last().start()

    # ---- 2) overlapped with the DMA (all regions are disjoint from its target) ----
    # halo rows outside the image: zero them at the staging buffer so the splice below
    # propagates the zeros (the DMA never writes these rows).
    zrow3 = jnp.zeros((3, W, C), jnp.float32)

    @pl.when(i == 0)
    def _():
        xin[0:3] = zrow3

    @pl.when(i == n_tiles - 1)
    def _():
        xin[th + 3:th + 6] = zrow3

    # left / right zero-padding columns (never overwritten by the splice)
    zcol = jnp.zeros((th + 6, 3, C), jnp.float32)
    xbuf[:, 0:3, :] = zcol
    xbuf[:, W + 3:W + 6, :] = zcol

    # bias-init the resident output tile
    o_ref[0] = jnp.broadcast_to(b_ref[0], (th, W, C)).astype(o_ref.dtype)

    # ---- 3) wait for the DMA and splice the fetched rows into the working buffer ----
    if n_tiles == 1:
        cp_single().wait()
    else:
        @pl.when(i == 0)
        def _():
            cp_first().wait()

        @pl.when(jnp.logical_and(i > 0, i < n_tiles - 1))
        def _():
            cp_mid().wait()

        @pl.when(i == n_tiles - 1)
        def _():
            cp_last().wait()

    xbuf[:, 3:3 + W, :] = xin[...]

    # ---- 4) 7x7 depthwise accumulation: loop kh, unroll kw, accumulate into o_ref ----
    @pl.loop(0, 7)
    def _(dh):
        wrow = w_ref[dh]                                       # (7, C)
        xslab = xbuf[pl.ds(dh, th)]                            # (th, W+6, C)
        part = xslab[:, 0:W, :] * wrow[0]
        for dw in range(1, 7):
            part = part + xslab[:, dw:dw + W, :] * wrow[dw]
        o_ref[0] += part.astype(o_ref.dtype)


def dwconv7x7(x, w, b):
    N, H, W, C = x.shape
    th = _pick_dw_tile(H)
    n_tiles = H // th
    kernel = functools.partial(_dwconv_kernel, th=th, H=H, W=W, n_tiles=n_tiles)
    return pl.pallas_call(
        kernel,
        out_shape=jax.ShapeDtypeStruct((N, H, W, C), jnp.float32),
        grid=(N, n_tiles),
        in_specs=[pl.BlockSpec(memory_space=pl.ANY),
                  pl.BlockSpec((7, 7, C), lambda n, i: (0, 0, 0)),
                  pl.BlockSpec((1, C), lambda n, i: (0, 0))],
        out_specs=pl.BlockSpec((1, th, W, C), lambda n, i: (n, i, 0, 0)),
        scratch_shapes=[pltpu.VMEM((th + 6, W, C), jnp.float32),
                        pltpu.VMEM((th + 6, W + 6, C), jnp.float32),
                        pltpu.SemaphoreType.DMA(())],
        compiler_params=pltpu.CompilerParams(
            dimension_semantics=("parallel", "parallel")),
    )(x, w, b)


# --------------------------------------------------------------------------
# BlockV2 MLP, split around the (spatially global) GRN statistic:
#   pre : LN -> Linear(d,4d) -> GELU, plus per-batch sum of h^2 (for the GRN norm)
#         (h is stored bf16: it is the largest intermediate; the GRN statistic is
#          accumulated from the f32 h before the cast)
#   grn : Nx = ||h|| / (mean_c ||h|| + 1e-6)        (tiny per-batch kernel)
#   post: gamma*(h*Nx) + beta + h -> Linear(4d,d) -> + residual
# --------------------------------------------------------------------------
def _block_pre_kernel(y_ref, lnw_ref, lnb_ref, w1_ref, b1_ref, h_ref, ss_ref, *, eps):
    y = y_ref[0].astype(jnp.float32)                           # (tr, C)
    mu = jnp.mean(y, axis=-1, keepdims=True)
    yc = y - mu
    var = jnp.mean(yc * yc, axis=-1, keepdims=True)
    xn = yc * lax.rsqrt(var + eps) * lnw_ref[...] + lnb_ref[...]
    h = jnp.dot(xn.astype(jnp.bfloat16), w1_ref[...],
                preferred_element_type=jnp.float32) + b1_ref[...]
    h = 0.5 * h * (1.0 + lax.erf(h * _SQRT1_2))                # exact (erf) GELU
    h_ref[0] = h.astype(h_ref.dtype)

    @pl.when(pl.program_id(1) == 0)
    def _():
        ss_ref[...] = jnp.zeros_like(ss_ref)

    ss_ref[0] += jnp.sum(h * h, axis=0, keepdims=True)


def block_pre(y, lnw, lnb, w1, b1, eps=1e-6):
    N, R, C = y.shape
    C4 = w1.shape[1]
    tr = _pick_tile(R, _MXU_ROW_TILE)
    return pl.pallas_call(
        functools.partial(_block_pre_kernel, eps=eps),
        out_shape=(jax.ShapeDtypeStruct((N, R, C4), jnp.bfloat16),
                   jax.ShapeDtypeStruct((N, 1, C4), jnp.float32)),
        grid=(N, R // tr),
        in_specs=[pl.BlockSpec((1, tr, C), lambda n, r: (n, r, 0)),
                  pl.BlockSpec((1, C), lambda n, r: (0, 0)),
                  pl.BlockSpec((1, C), lambda n, r: (0, 0)),
                  pl.BlockSpec((C, C4), lambda n, r: (0, 0)),
                  pl.BlockSpec((1, C4), lambda n, r: (0, 0))],
        out_specs=(pl.BlockSpec((1, tr, C4), lambda n, r: (n, r, 0)),
                   pl.BlockSpec((1, 1, C4), lambda n, r: (n, 0, 0))),
        compiler_params=pltpu.CompilerParams(
            dimension_semantics=("parallel", "arbitrary")),
    )(y, lnw, lnb, w1, b1)


def _grn_stats_kernel(ss_ref, nx_ref):
    gx = jnp.sqrt(ss_ref[...].astype(jnp.float32))             # (N,1,C4)  ||h||_2
    nx_ref[...] = (gx / (jnp.mean(gx, axis=-1, keepdims=True) + 1e-6)).astype(nx_ref.dtype)


def grn_stats(ss):
    N, _, C4 = ss.shape
    return pl.pallas_call(
        _grn_stats_kernel,
        out_shape=jax.ShapeDtypeStruct((N, 1, C4), jnp.float32),
        grid=(1,),
        in_specs=[pl.BlockSpec((N, 1, C4), lambda i: (0, 0, 0))],
        out_specs=pl.BlockSpec((N, 1, C4), lambda i: (0, 0, 0)),
    )(ss)


def _block_post_kernel(h_ref, x_ref, nx_ref, g_ref, bt_ref, w2_ref, b2_ref, o_ref):
    h = h_ref[0].astype(jnp.float32)                           # (tr, C4)
    nx = nx_ref[0].astype(jnp.float32)                         # (1, C4)
    u = g_ref[...] * (h * nx) + bt_ref[...] + h                # GRN
    out = jnp.dot(u.astype(jnp.bfloat16), w2_ref[...],
                  preferred_element_type=jnp.float32) + b2_ref[...]
    o_ref[0] = (x_ref[0].astype(jnp.float32) + out).astype(o_ref.dtype)


def block_post(h, x_res, nx, g, bt, w2, b2):
    N, R, C4 = h.shape
    C = w2.shape[1]
    tr = _pick_tile(R, _MXU_ROW_TILE)
    return pl.pallas_call(
        _block_post_kernel,
        out_shape=jax.ShapeDtypeStruct((N, R, C), jnp.float32),
        grid=(N, R // tr),
        in_specs=[pl.BlockSpec((1, tr, C4), lambda n, r: (n, r, 0)),
                  pl.BlockSpec((1, tr, C), lambda n, r: (n, r, 0)),
                  pl.BlockSpec((1, 1, C4), lambda n, r: (n, 0, 0)),
                  pl.BlockSpec((1, C4), lambda n, r: (0, 0)),
                  pl.BlockSpec((1, C4), lambda n, r: (0, 0)),
                  pl.BlockSpec((C4, C), lambda n, r: (0, 0)),
                  pl.BlockSpec((1, C), lambda n, r: (0, 0))],
        out_specs=pl.BlockSpec((1, tr, C), lambda n, r: (n, r, 0)),
        compiler_params=pltpu.CompilerParams(
            dimension_semantics=("parallel", "parallel")),
    )(h, x_res, nx, g, bt, w2, b2)


# --------------------------------------------------------------------------
# global mean over H*W, final LayerNorm + classification head
# --------------------------------------------------------------------------
def _pool_kernel(x_ref, o_ref, *, inv_r):
    @pl.when(pl.program_id(1) == 0)
    def _():
        o_ref[...] = jnp.zeros_like(o_ref)

    o_ref[0] += jnp.sum(x_ref[0].astype(jnp.float32), axis=0, keepdims=True)

    @pl.when(pl.program_id(1) == pl.num_programs(1) - 1)
    def _():
        o_ref[...] = o_ref[...] * inv_r


def global_avg_pool(x3):
    N, R, C = x3.shape
    tr = _pick_tile(R, _VPU_ROW_TILE)
    return pl.pallas_call(
        functools.partial(_pool_kernel, inv_r=1.0 / R),
        out_shape=jax.ShapeDtypeStruct((N, 1, C), jnp.float32),
        grid=(N, R // tr),
        in_specs=[pl.BlockSpec((1, tr, C), lambda n, r: (n, r, 0))],
        out_specs=pl.BlockSpec((1, 1, C), lambda n, r: (n, 0, 0)),
        compiler_params=pltpu.CompilerParams(
            dimension_semantics=("parallel", "arbitrary")),
    )(x3)


def _ln_head_kernel(x_ref, g_ref, b_ref, w_ref, hb_ref, o_ref, *, eps):
    x = x_ref[...].astype(jnp.float32)
    mu = jnp.mean(x, axis=-1, keepdims=True)
    xc = x - mu
    var = jnp.mean(xc * xc, axis=-1, keepdims=True)
    y = xc * lax.rsqrt(var + eps) * g_ref[...] + b_ref[...]
    out = jnp.dot(y.astype(jnp.bfloat16), w_ref[...],
                  preferred_element_type=jnp.float32) + hb_ref[...]
    o_ref[...] = out.astype(o_ref.dtype)


def ln_head(x2, g, b, hw, hb, eps=1e-6):
    N, C = x2.shape
    M = hw.shape[1]
    return pl.pallas_call(
        functools.partial(_ln_head_kernel, eps=eps),
        out_shape=jax.ShapeDtypeStruct((N, M), jnp.float32),
        grid=(1,),
        in_specs=[pl.BlockSpec((N, C), lambda i: (0, 0)),
                  pl.BlockSpec((1, C), lambda i: (0, 0)),
                  pl.BlockSpec((1, C), lambda i: (0, 0)),
                  pl.BlockSpec((C, M), lambda i: (0, 0)),
                  pl.BlockSpec((1, M), lambda i: (0, 0))],
        out_specs=pl.BlockSpec((N, M), lambda i: (0, 0)),
    )(x2, g, b, hw, hb)


# ------------------------------ model glue ---------------------------------
def _downsample(x, p, stage):
    N, H, W, C = x.shape
    cout = p['conv_w'].shape[-1]
    if stage == 0:
        k = 4
        patches = x.reshape(N, H // k, k, W // k, k, C)
        patches = patches.transpose(0, 1, 3, 2, 4, 5).reshape(
            N * (H // k) * (W // k), k * k * C)
        out = stem_conv_ln(patches, p['conv_w'], p['conv_b'], p['ln_w'], p['ln_b'])
        return out.reshape(N, H // k, W // k, cout)
    k = 2
    patches = x.reshape(N, H // k, k, W // k, k, C)
    patches = patches.transpose(2, 4, 0, 1, 3, 5).reshape(
        k * k, N * (H // k) * (W // k), C)
    out = ln_downconv(patches, p['ln_w'], p['ln_b'], p['conv_w'], p['conv_b'])
    return out.reshape(N, H // k, W // k, cout)


def _blockv2(x, p):
    N, H, W, C = x.shape
    y = dwconv7x7(x, p['dw_w'], p['dw_b'])
    R = H * W
    y2 = y.reshape(N, R, C)
    x2 = x.reshape(N, R, C)
    h, ss = block_pre(y2, p['ln_w'], p['ln_b'], p['w1'], p['b1'])
    nx = grn_stats(ss)
    out = block_post(h, x2, nx, p['grn_g'], p['grn_b'], p['w2'], p['b2'])
    return out.reshape(N, H, W, C)


def convnextv2_forward(x_nchw, params):
    x = jnp.transpose(x_nchw, (0, 2, 3, 1)).astype(jnp.float32)    # NCHW -> NHWC
    for i in range(4):
        x = _downsample(x, params['down'][i], i)
        for blk in params['stages'][i]:
            x = _blockv2(x, blk)
    N, H, W, C = x.shape
    pooled = global_avg_pool(x.reshape(N, H * W, C)).reshape(N, C)  # mean over H,W
    return ln_head(pooled, params['norm_w'], params['norm_b'],
                   params['head_w'], params['head_b'])


# ------------------------- deterministic parameters -------------------------
def init_params(key, in_chans, dims, depths, num_classes):
    keys = iter(jax.random.split(key, 256))

    def tn(shape):   # trunc_normal_(std=0.02), truncated at +-2 std
        return 0.02 * jax.random.truncated_normal(next(keys), -2.0, 2.0, shape, jnp.float32)

    params = {'down': [], 'stages': []}

    # stem: Conv2d(in_chans, dims[0], 4, stride 4) + LN(channels_first)
    w = tn((dims[0], in_chans, 4, 4))
    params['down'].append({
        'conv_w': jnp.transpose(w, (2, 3, 1, 0)).reshape(16 * in_chans, dims[0]).astype(jnp.bfloat16),
        'conv_b': jnp.zeros((1, dims[0]), jnp.float32),
        'ln_w': jnp.ones((1, dims[0]), jnp.float32),
        'ln_b': jnp.zeros((1, dims[0]), jnp.float32),
    })
    # downsamples 1..3: LN(channels_first) + Conv2d(dims[i], dims[i+1], 2, stride 2)
    for i in range(3):
        w = tn((dims[i + 1], dims[i], 2, 2))
        params['down'].append({
            'ln_w': jnp.ones((1, dims[i]), jnp.float32),
            'ln_b': jnp.zeros((1, dims[i]), jnp.float32),
            'conv_w': jnp.transpose(w, (2, 3, 1, 0)).reshape(4, dims[i], dims[i + 1]).astype(jnp.bfloat16),
            'conv_b': jnp.zeros((1, dims[i + 1]), jnp.float32),
        })
    # BlockV2 stages
    for i in range(4):
        blocks = []
        d = dims[i]
        for _ in range(depths[i]):
            dw = tn((d, 1, 7, 7))                               # PyTorch depthwise layout
            blocks.append({
                'dw_w': jnp.transpose(dw[:, 0], (1, 2, 0)),     # (7,7,d), f32
                'dw_b': jnp.zeros((1, d), jnp.float32),
                'ln_w': jnp.ones((1, d), jnp.float32),
                'ln_b': jnp.zeros((1, d), jnp.float32),
                'w1': tn((d, 4 * d)).astype(jnp.bfloat16),
                'b1': jnp.zeros((1, 4 * d), jnp.float32),
                'grn_g': jnp.zeros((1, 4 * d), jnp.float32),
                'grn_b': jnp.zeros((1, 4 * d), jnp.float32),
                'w2': tn((4 * d, d)).astype(jnp.bfloat16),
                'b2': jnp.zeros((1, d), jnp.float32),
            })
        params['stages'].append(blocks)
    params['norm_w'] = jnp.ones((1, dims[-1]), jnp.float32)
    params['norm_b'] = jnp.zeros((1, dims[-1]), jnp.float32)
    params['head_w'] = tn((dims[-1], num_classes)).astype(jnp.bfloat16)
    params['head_b'] = jnp.zeros((1, num_classes), jnp.float32)
    return params


# ---------------------------------- main ------------------------------------
if __name__ == "__main__":
    key = jax.random.PRNGKey(0)
    kx, kp = jax.random.split(key)

    # Small shapes consistent with the module: NCHW image batch.
    N, Cin, H, W = 2, 3, 32, 32
    dims = (16, 32, 64, 128)       # scaled-down stand-in for [96,192,384,768]
    depths = (1, 1, 2, 1)          # scaled-down stand-in for [3,3,9,3]
    num_classes = 16

    x = jax.random.normal(kx, (N, Cin, H, W), jnp.float32)
    params = init_params(kp, Cin, dims, depths, num_classes)

    out = convnextv2_forward(x, params)
    out = jax.block_until_ready(out)

    expected = (N, num_classes)
    assert out.shape == expected, (out.shape, expected)
    assert bool(jnp.all(jnp.isfinite(out)))
    print("KERNEL_OK")
</pallas_src>

<mosaic_0001>
module attributes {stable_mosaic.version = 11 : i64} {
  func.func @_stem_kernel(%arg0: i32, %arg1: memref<128x48xf32, #tpu.memory_space<vmem>>, %arg2: memref<48x16xbf16, #tpu.memory_space<vmem>>, %arg3: memref<1x16xf32, #tpu.memory_space<vmem>>, %arg4: memref<1x16xf32, #tpu.memory_space<vmem>>, %arg5: memref<1x16xf32, #tpu.memory_space<vmem>>, %arg6: memref<128x16xf32, #tpu.memory_space<vmem>>) attributes {dimension_semantics = [#tpu.dimension_semantics<parallel>], iteration_bounds = array<i64: 1>, scalar_prefetch = 0 : i64, scratch_operands = 0 : i64, tpu.core_type = #tpu.core_type<tc>, window_params = [{transform_indices = @transform_0, window_bounds = array<i64: 128, 48>}, {pipeline_mode = #tpu.pipeline_mode<synchronous>, transform_indices = @transform_1, window_bounds = array<i64: 48, 16>}, {pipeline_mode = #tpu.pipeline_mode<synchronous>, transform_indices = @transform_2, window_bounds = array<i64: 1, 16>}, {pipeline_mode = #tpu.pipeline_mode<synchronous>, transform_indices = @transform_3, window_bounds = array<i64: 1, 16>}, {pipeline_mode = #tpu.pipeline_mode<synchronous>, transform_indices = @transform_4, window_bounds = array<i64: 1, 16>}, {transform_indices = @transform_5, window_bounds = array<i64: 128, 16>}]} {
    %c0 = arith.constant 0 : index
    %c0_0 = arith.constant 0 : index
    %0 = vector.load %arg1[%c0, %c0_0] : memref<128x48xf32, #tpu.memory_space<vmem>>, vector<128x48xf32>
    %1 = arith.truncf %0 : vector<128x48xf32> to vector<128x48xbf16>
    %c0_1 = arith.constant 0 : index
    %c0_2 = arith.constant 0 : index
    %2 = vector.load %arg2[%c0_1, %c0_2] : memref<48x16xbf16, #tpu.memory_space<vmem>>, vector<48x16xbf16>
    %cst = arith.constant dense<0.000000e+00> : vector<128x16xf32>
    %3 = tpu.matmul %1, %2, %cst {dimension_numbers = #tpu.dot_dimension_numbers<[1], [0], [0], [1], [0, 0, 1, 1], [], []>} : vector<128x48xbf16>, vector<48x16xbf16>, vector<128x16xf32> -> vector<128x16xf32>
    %c0_3 = arith.constant 0 : index
    %c0_4 = arith.constant 0 : index
    %4 = vector.load %arg3[%c0_3, %c0_4] : memref<1x16xf32, #tpu.memory_space<vmem>>, vector<1x16xf32>
    %5 = vector.broadcast %4 : vector<1x16xf32> to vector<128x16xf32>
    %6 = arith.addf %3, %5 : vector<128x16xf32>
    %cst_5 = arith.constant dense<0.000000e+00> : vector<128xf32>
    %7 = vector.multi_reduction <add>, %6, %cst_5 [1] : vector<128x16xf32> to vector<128xf32>
    %8 = vector.shape_cast %7 : vector<128xf32> to vector<128x1xf32>
    %cst_6 = arith.constant 1.600000e+01 : f32
    %9 = vector.broadcast %cst_6 : f32 to vector<128x1xf32>
    %10 = arith.divf %8, %9 : vector<128x1xf32>
    %11 = vector.broadcast %10 : vector<128x1xf32> to vector<128x16xf32>
    %12 = arith.subf %6, %11 : vector<128x16xf32>
    %13 = arith.mulf %12, %12 : vector<128x16xf32>
    %cst_7 = arith.constant dense<0.000000e+00> : vector<128xf32>
    %14 = vector.multi_reduction <add>, %13, %cst_7 [1] : vector<128x16xf32> to vector<128xf32>
    %15 = vector.shape_cast %14 : vector<128xf32> to vector<128x1xf32>
    %cst_8 = arith.constant 1.600000e+01 : f32
    %16 = vector.broadcast %cst_8 : f32 to vector<128x1xf32>
    %17 = arith.divf %15, %16 : vector<128x1xf32>
    %cst_9 = arith.constant 9.99999997E-7 : f32
    %18 = vector.broadcast %cst_9 : f32 to vector<128x1xf32>
    %19 = arith.addf %17, %18 : vector<128x1xf32>
    %20 = math.rsqrt %19 : vector<128x1xf32>
    %21 = vector.broadcast %20 : vector<128x1xf32> to vector<128x16xf32>
    %22 = arith.mulf %12, %21 : vector<128x16xf32>
    %c0_10 = arith.constant 0 : index
    %c0_11 = arith.constant 0 : index
    %23 = vector.load %arg4[%c0_10, %c0_11] : memref<1x16xf32, #tpu.memory_space<vmem>>, vector<1x16xf32>
    %24 = vector.broadcast %23 : vector<1x16xf32> to vector<128x16xf32>
    %25 = arith.mulf %22, %24 : vector<128x16xf32>
    %c0_12 = arith.constant 0 : index
    %c0_13 = arith.constant 0 : index
    %26 = vector.load %arg5[%c0_12, %c0_13] : memref<1x16xf32, #tpu.memory_space<vmem>>, vector<1x16xf32>
    %27 = vector.broadcast %26 : vector<1x16xf32> to vector<128x16xf32>
    %28 = arith.addf %25, %27 : vector<128x16xf32>
    %c0_14 = arith.constant 0 : index
    %c0_15 = arith.constant 0 : index
    %29 = vector.load %arg6[%c0_14, %c0_15] : memref<128x16xf32, #tpu.memory_space<vmem>>, vector<128x16xf32>
    tpu.vector_store %arg6[%c0_14, %c0_15], %28 {strides = array<i32>} : memref<128x16xf32, #tpu.memory_space<vmem>>, vector<128x16xf32>,
    return
  }
  func.func @transform_0(%arg0: i32) -> (i32, i32) {
    %c0_i32 = arith.constant 0 : i32
    %c0_i32_0 = arith.constant 0 : i32
    return %arg0, %c0_i32 : i32, i32
  }
  func.func @transform_1(%arg0: i32) -> (i32, i32) {
    %c0_i32 = arith.constant 0 : i32
    %c0_i32_0 = arith.constant 0 : i32
    %c0_i32_1 = arith.constant 0 : i32
    return %c0_i32, %c0_i32_0 : i32, i32
  }
  func.func @transform_2(%arg0: i32) -> (i32, i32) {
    %c0_i32 = arith.constant 0 : i32
    %c0_i32_0 = arith.constant 0 : i32
    %c0_i32_1 = arith.constant 0 : i32
    return %c0_i32, %c0_i32_0 : i32, i32
  }
  func.func @transform_3(%arg0: i32) -> (i32, i32) {
    %c0_i32 = arith.constant 0 : i32
    %c0_i32_0 = arith.constant 0 : i32
    %c0_i32_1 = arith.constant 0 : i32
    return %c0_i32, %c0_i32_0 : i32, i32
  }
  func.func @transform_4(%arg0: i32) -> (i32, i32) {
    %c0_i32 = arith.constant 0 : i32
    %c0_i32_0 = arith.constant 0 : i32
    %c0_i32_1 = arith.constant 0 : i32
    return %c0_i32, %c0_i32_0 : i32, i32
  }
  func.func @transform_5(%arg0: i32) -> (i32, i32) {
    %c0_i32 = arith.constant 0 : i32
    %c0_i32_0 = arith.constant 0 : i32
    return %arg0, %c0_i32 : i32, i32
  }
}

</mosaic_0001>

<bundles_post_ra>
// kernel: tpu_custom_call.1
= control target key start
LH: loop header
LB: loop body
LE: loop exit
PB: predicated region body
PF: predicated region fallthrough
CT: control target
= control target key end

     0   :  { %vm73_vm0 = vcmask 392192   ;;  %vm147_vm1 = vcmask 130048   ;;  %s1160_s1 = inlined_call_operand.vmem [shape: bf16[48,16], index: 1, kind: input, shape index: {}]   ;;  %s1161_s0 = inlined_call_operand.vmem [shape: f32[128,48], index: 0, kind: input, shape index: {}]   ;;  %s1162_s2 = inlined_call_operand.vmem [shape: f32[1,16], index: 2, kind: input, shape index: {}]   ;;  %s1163_s3 = inlined_call_operand.vmem [shape: f32[1,16], index: 3, kind: input, shape index: {}]   ;;  %s1164_s4 = inlined_call_operand.vmem [shape: f32[1,16], index: 4, kind: input, shape index: {}]   ;;  %s1165_s5 = inlined_call_operand.vmem [shape: f32[128,16], index: 5, kind: output, shape index: {}]  }
   0x1   :  { %v589_v0 = vld [vmem:[%s1160_s1 + $0x10] sm:$0xff]  ;;  %v588_v1 = vld [vmem:[%s1160_s1 + $0x8] sm:$0xff]  ;;  %v587_v2 = vld [vmem:[%s1160_s1] sm:$0xff] }
   0x2   :  { %103 = vmatpush.bf16.msra.mxu0 %v589_v0  ;;  %590 = vmatpush.bf16.msra.mxu1 %v589_v0  ;;  %v21_v3 = vld [vmem:[%s1161_s0] sm:$0xff]  ;;  %v22_v4 = vld [vmem:[%s1161_s0 + $0x8] sm:$0xff]  ;;  %v23_v15 = vld [vmem:[%s1161_s0 + $0x10] sm:$0xff] }
   0x3   :  { %591 = vmatpush.bf16.msra.mxu2 %v589_v0  ;;  %592 = vmatpush.bf16.msra.mxu3 %v589_v0  ;;  %v25_v5 = vld [vmem:[%s1161_s0 + $0x20] sm:$0xff]  ;;  %v26_v6 = vld [vmem:[%s1161_s0 + $0x28] sm:$0xff]  ;;  %v37_v11 = vpack.c.bf16 %v22_v4, %v21_v3  ;;  %v24_v16 = vld [vmem:[%s1161_s0 + $0x18] sm:$0xff] }
   0x4   :  { %v29_v7 = vld [vmem:[%s1161_s0 + $0x40] sm:$0xff]  ;;  %v30_v8 = vld [vmem:[%s1161_s0 + $0x48] sm:$0xff]  ;;  %v39_v12 = vpack.c.bf16 %v26_v6, %v25_v5  ;;  %v31_v17 = vld [vmem:[%s1161_s0 + $0x50] sm:$0xff]  ;;  %v38_v23 = vpack.c.bf16 %v24_v16, %v23_v15 }
   0x5   :  { %v33_v9 = vld [vmem:[%s1161_s0 + $0x60] sm:$0xff]  ;;  %v34_v10 = vld [vmem:[%s1161_s0 + $0x68] sm:$0xff]  ;;  %v41_v13 = vpack.c.bf16 %v30_v8, %v29_v7  ;;  %v27_v18 = vld [vmem:[%s1161_s0 + $0x30] sm:$0xff] }
   0x6   :  { %104 = vmatpush.bf16.msra.mxu0 %v588_v1  ;;  %593 = vmatpush.bf16.msra.mxu1 %v588_v1  ;;  %v43_v14 = vpack.c.bf16 %v34_v10, %v33_v9  ;;  %v28_v19 = vld [vmem:[%s1161_s0 + $0x38] sm:$0xff]  ;;  %v35_v21 = vld [vmem:[%s1161_s0 + $0x70] sm:$0xff]  ;;  %v736_v27 = vld [vmem:[%s1162_s2] ss:$0 sm:$0xff] }
   0x7   :  { %594 = vmatpush.bf16.msra.mxu2 %v588_v1  ;;  %595 = vmatpush.bf16.msra.mxu3 %v588_v1  ;;  %v32_v20 = vld [vmem:[%s1161_s0 + $0x58] sm:$0xff]  ;;  %v40_v24 = vpack.c.bf16 %v28_v19, %v27_v18 }
   0x8   :  { %v36_v22 = vld [vmem:[%s1161_s0 + $0x78] sm:$0xff]  ;;  %v42_v25 = vpack.c.bf16 %v32_v20, %v31_v17 }
   0x9   :  { %v44_v26 = vpack.c.bf16 %v36_v22, %v35_v21 }
   0xa   :  { %105 = vmatpush.bf16.msra.mxu0 %v587_v2  ;;  %596 = vmatpush.bf16.msra.mxu1 %v587_v2 }
   0xb   :  { %597 = vmatpush.bf16.msra.mxu2 %v587_v2  ;;  %598 = vmatpush.bf16.msra.mxu3 %v587_v2 }
   0xd   :  { %579 = vmatmul.msk.bf16.vlgmr.msra.gmra.mxu0 %vm73_vm0, %v37_v11  ;;  %581 = vmatmul.msk.bf16.vlgmr.msra.gmra.mxu1 %vm73_vm0, %v39_v12  ;;  %v637_v12 = vmov 16.0  }
   0xe   :  { %583 = vmatmul.msk.bf16.vlgmr.msra.gmra.mxu2 %vm73_vm0, %v41_v13  ;;  %585 = vmatmul.msk.bf16.vlgmr.msra.gmra.mxu3 %vm73_vm0, %v43_v14  ;;  %603 = vrcp.f32 %v637_v12 }
  0x14   :  { %v604_v13 = vpop.eup %603 }
  0x15   :  { %v197_v14 = vmul.f32 16.0, %v604_v13  ;;  %vm201_vm2 = vweird.f32 %v604_v13 }
  0x17   :  { %v198_v15 = vsub.f32 1.0, %v197_v14 }
  0x19   :  { %v199_v16 = vmul.f32 %v604_v13, %v198_v15 }
  0x1b   :  { %v200_v17 = vadd.f32 %v604_v13, %v199_v16 }
  0x1d   :  { %580 = vmatmul.msk.bf16.gmra.mxu0 %vm73_vm0, %v38_v23  ;;  %582 = vmatmul.msk.bf16.gmra.mxu1 %vm73_vm0, %v40_v24  ;;  %v818_v18 = vsel %vm201_vm2, %v604_v13, %v200_v17 }
  0x1e   :  { %584 = vmatmul.msk.bf16.gmra.mxu2 %vm73_vm0, %v42_v25  ;;  %586 = vmatmul.msk.bf16.gmra.mxu3 %vm73_vm0, %v44_v26 }
  0x8a   :  { %v107_v28 = vpop.f32.mrf.mxu0  ;;  %v117_v29 = vpop.f32.mrf.mxu1 }
  0x8b   :  { %v739_v30 = vadd.f32 %v736_v27, %v107_v28  ;;  %v742_v31 = vadd.f32 %v736_v27, %v117_v29 }
  0x8d   :  { %v160_v32 = vsel %vm147_vm1, %v742_v31, 0.0  ;;  %v148_v33 = vsel %vm147_vm1, %v739_v30, 0.0 }
  0x8e   :  { %161 = vadd.xlane.f32.xlu2 %v160_v32  ;;  %149 = vadd.xlane.f32.xlu0 %v148_v33 }
  0x91   :  { %v127_v34 = vpop.f32.mrf.mxu2  ;;  %v137_v35 = vpop.f32.mrf.mxu3 }
  0x92   :  { %v749_v36 = vadd.f32 %v736_v27, %v127_v34  ;;  %v752_v37 = vadd.f32 %v736_v27, %v137_v35  ;;  %v109_v38 = vpop.f32.mrf.mxu0  ;;  %v119_v41 = vpop.f32.mrf.mxu1 }
  0x93   :  { %v759_v42 = vadd.f32 %v736_v27, %v109_v38  ;;  %v762_v43 = vadd.f32 %v736_v27, %v119_v41 }
  0x94   :  { %v172_v39 = vsel %vm147_vm1, %v749_v36, 0.0  ;;  %v184_v40 = vsel %vm147_vm1, %v752_v37, 0.0 }
  0x95   :  { %v163_v49 = vsel %vm147_vm1, %v762_v43, 0.0  ;;  %v151_v50 = vsel %vm147_vm1, %v759_v42, 0.0 }
  0x96   :  { %173 = vadd.xlane.f32.xlu2 %v172_v39  ;;  %185 = vadd.xlane.f32.xlu0 %v184_v40 }
  0x99   :  { %v129_v44 = vpop.f32.mrf.mxu2  ;;  %v139_v45 = vpop.f32.mrf.mxu3 }
  0x9a   :  { %v765_v46 = vadd.f32 %v736_v27, %v139_v45  ;;  %v112_v48 = vpop.f32.mrf.mxu0  ;;  %v777_v52 = vadd.f32 %v736_v27, %v129_v44  ;;  %v122_v58 = vpop.f32.mrf.mxu1 }
  0x9b   :  { %v774_v51 = vadd.f32 %v736_v27, %v112_v48  ;;  %v787_v59 = vadd.f32 %v736_v27, %v122_v58 }
  0x9c   :  { %v187_v47 = vsel %vm147_vm1, %v765_v46, 0.0  ;;  %v175_v56 = vsel %vm147_vm1, %v777_v52, 0.0 }
  0x9d   :  { %188 = vadd.xlane.f32.xlu1 %v187_v47  ;;  %v154_v54 = vsel %vm147_vm1, %v774_v51, 0.0  ;;  %v166_v63 = vsel %vm147_vm1, %v787_v59, 0.0 }
  0x9e   :  { %164 = vadd.xlane.f32.xlu2 %v163_v49  ;;  %152 = vadd.xlane.f32.xlu0 %v151_v50 }
  0xa1   :  { %v132_v53 = vpop.f32.mrf.mxu2  ;;  %v142_v55 = vpop.f32.mrf.mxu3 }
  0xa2   :  { %v784_v57 = vadd.f32 %v736_v27, %v132_v53  ;;  %v114_v2 = vpop.f32.mrf.mxu0  ;;  %v799_v3 = vadd.f32 %v736_v27, %v142_v55  ;;  %v124_v9 = vpop.f32.mrf.mxu1 }
  0xa3   :  { %v805_v5 = vadd.f32 %v736_v27, %v114_v2  ;;  %v814_v10 = vadd.f32 %v736_v27, %v124_v9 }
  0xa4   :  { %v178_v62 = vsel %vm147_vm1, %v784_v57, 0.0  ;;  %v190_v6 = vsel %vm147_vm1, %v799_v3, 0.0 }
  0xa5   :  { %155 = vadd.xlane.f32.xlu1 %v154_v54  ;;  %v157_v8 = vsel %vm147_vm1, %v805_v5, 0.0  ;;  %v169_v11 = vsel %vm147_vm1, %v814_v10, 0.0 }
  0xa6   :  { %176 = vadd.xlane.f32.xlu0 %v175_v56 }
  0xa9   :  { %v134_v60 = vpop.f32.mrf.mxu2  ;;  %v144_v1 = vpop.f32.mrf.mxu3 }
  0xaa   :  { %v790_v61 = vadd.f32 %v736_v27, %v134_v60  ;;  %v802_v4 = vadd.f32 %v736_v27, %v144_v1 }
  0xac   :  { %v181_v0 = vsel %vm147_vm1, %v790_v61, 0.0  ;;  %v193_v7 = vsel %vm147_vm1, %v802_v4, 0.0 }
  0xad   :  { %182 = vadd.xlane.f32.xlu2 %v181_v0  ;;  %179 = vadd.xlane.f32.xlu1 %v178_v62 }
  0xae   :  { %167 = vadd.xlane.f32.xlu0 %v166_v63 }
  0xb5   :  { %191 = vadd.xlane.f32.xlu2 %v190_v6  ;;  %158 = vadd.xlane.f32.xlu1 %v157_v8 }
  0xb6   :  { %194 = vadd.xlane.f32.xlu0 %v193_v7 }
  0xbd   :  { %170 = vadd.xlane.f32.xlu1 %v169_v11 }
 0x101   :  { %v162_v19 = vpop.xlane.xlu2 %161  ;;  %v150_v20 = vpop.xlane.xlu0 %149 }
 0x102   :  { %v207_v21 = vmul.f32 %v818_v18, %v162_v19  ;;  %v203_v22 = vmul.f32 %v818_v18, %v150_v20 }
 0x104   :  { %v823_v23 = vsub.f32 %v742_v31, %v207_v21  ;;  %v826_v24 = vsub.f32 %v739_v30, %v203_v22 }
 0x106   :  { %v239_v25 = vmul.f32 %v823_v23, %v823_v23  ;;  %v235_v26 = vmul.f32 %v826_v24, %v826_v24 }
 0x108   :  { %v263_v27 = vsel %vm147_vm1, %v239_v25, 0.0  ;;  %v251_v28 = vsel %vm147_vm1, %v235_v26, 0.0 }
 0x109   :  { %264 = vadd.xlane.f32.xlu2 %v263_v27  ;;  %v174_v29 = vpop.xlane.xlu2 %173  ;;  %252 = vadd.xlane.f32.xlu1 %v251_v28  ;;  %v186_v32 = vpop.xlane.xlu0 %185 }
 0x10a   :  { %v211_v31 = vmul.f32 %v818_v18, %v174_v29  ;;  %v215_v33 = vmul.f32 %v818_v18, %v186_v32 }
 0x10c   :  { %v837_v30 = vsub.f32 %v749_v36, %v211_v31  ;;  %v840_v34 = vsub.f32 %v752_v37, %v215_v33 }
 0x10e   :  { %v243_v35 = vmul.f32 %v837_v30, %v837_v30  ;;  %v247_v38 = vmul.f32 %v840_v34, %v840_v34 }
 0x110   :  { %v846_v39 = vpop.xlane.xlu1 %188  ;;  %v275_v40 = vsel %vm147_vm1, %v243_v35, 0.0  ;;  %v287_v41 = vsel %vm147_vm1, %v247_v38, 0.0 }
 0x111   :  { %v165_v44 = vpop.xlane.xlu2 %164  ;;  %276 = vadd.xlane.f32.xlu0 %v275_v40  ;;  %288 = vadd.xlane.f32.xlu1 %v287_v41  ;;  %v153_v36 = vpop.xlane.xlu0 %152 }
 0x112   :  { %v208_v45 = vmul.f32 %v818_v18, %v165_v44  ;;  %v204_v37 = vmul.f32 %v818_v18, %v153_v36 }
 0x114   :  { %v853_v47 = vsub.f32 %v762_v43, %v208_v45  ;;  %v856_v48 = vsub.f32 %v759_v42, %v204_v37 }
 0x116   :  { %v240_v49 = vmul.f32 %v853_v47, %v853_v47  ;;  %v236_v50 = vmul.f32 %v856_v48, %v856_v48 }
 0x118   :  { %v156_v53 = vpop.xlane.xlu1 %155  ;;  %v266_v54 = vsel %vm147_vm1, %v240_v49, 0.0  ;;  %v254_v55 = vsel %vm147_vm1, %v236_v50, 0.0 }
 0x119   :  { %v205_v56 = vmul.f32 %v818_v18, %v156_v53  ;;  %267 = vadd.xlane.f32.xlu0 %v266_v54  ;;  %255 = vadd.xlane.f32.xlu2 %v254_v55  ;;  %v177_v43 = vpop.xlane.xlu0 %176 }
 0x11a   :  { %v212_v58 = vmul.f32 %v818_v18, %v177_v43 }
 0x11b   :  { %v867_v42 = vsub.f32 %v774_v51, %v205_v56 }
 0x11c   :  { %v870_v60 = vsub.f32 %v777_v52, %v212_v58 }
 0x11d   :  { %v237_v62 = vmul.f32 %v867_v42, %v867_v42 }
 0x11e   :  { %v244_v63 = vmul.f32 %v870_v60, %v870_v60 }
 0x11f   :  { %v257_v2 = vsel %vm147_vm1, %v237_v62, 0.0 }
 0x120   :  { %v183_v0 = vpop.xlane.xlu2 %182  ;;  %v180_v1 = vpop.xlane.xlu1 %179  ;;  %v278_v6 = vsel %vm147_vm1, %v244_v63, 0.0 }
 0x121   :  { %v214_v7 = vmul.f32 %v818_v18, %v183_v0  ;;  %v213_v51 = vmul.f32 %v818_v18, %v180_v1  ;;  %258 = vadd.xlane.f32.xlu0 %v257_v2  ;;  %279 = vadd.xlane.f32.xlu1 %v278_v6  ;;  %v168_v52 = vpop.xlane.xlu0 %167 }
 0x122   :  { %v209_v8 = vmul.f32 %v818_v18, %v168_v52 }
 0x123   :  { %v882_v9 = vsub.f32 %v790_v61, %v214_v7  ;;  %v885_v11 = vsub.f32 %v784_v57, %v213_v51 }
 0x124   :  { %v888_v12 = vsub.f32 %v787_v59, %v209_v8 }
 0x125   :  { %v245_v13 = vmul.f32 %v885_v11, %v885_v11  ;;  %v246_v14 = vmul.f32 %v882_v9, %v882_v9 }
 0x126   :  { %v241_v15 = vmul.f32 %v888_v12, %v888_v12 }
 0x127   :  { %v281_v16 = vsel %vm147_vm1, %v245_v13, 0.0  ;;  %v284_v57 = vsel %vm147_vm1, %v246_v14, 0.0 }
 0x128   :  { %v192_v17 = vpop.xlane.xlu2 %191  ;;  %v159_v61 = vpop.xlane.xlu1 %158  ;;  %282 = vadd.xlane.f32.xlu2 %v281_v16  ;;  %v269_v19 = vsel %vm147_vm1, %v241_v15, 0.0 }
 0x129   :  { %v217_v59 = vmul.f32 %v818_v18, %v192_v17  ;;  %v206_v20 = vmul.f32 %v818_v18, %v159_v61  ;;  %285 = vadd.xlane.f32.xlu0 %v284_v57  ;;  %270 = vadd.xlane.f32.xlu1 %v269_v19  ;;  %v195_v21 = vpop.xlane.xlu0 %194 }
 0x12a   :  { %v218_v26 = vmul.f32 %v818_v18, %v195_v21  ;;  %v955_v21 = vld [vmem:[%s1163_s3] ss:$0 sm:$0xff] }
 0x12b   :  { %v902_v22 = vsub.f32 %v799_v3, %v217_v59  ;;  %v905_v25 = vsub.f32 %v805_v5, %v206_v20  ;;  %v216_v5 = vmul.f32 %v818_v18, %v846_v39 }
 0x12c   :  { %v913_v29 = vsub.f32 %v802_v4, %v218_v26 }
 0x12d   :  { %v249_v27 = vmul.f32 %v902_v22, %v902_v22  ;;  %v238_v28 = vmul.f32 %v905_v25, %v905_v25  ;;  %v928_v40 = vsub.f32 %v765_v46, %v216_v5 }
 0x12e   :  { %v250_v38 = vmul.f32 %v913_v29, %v913_v29 }
 0x12f   :  { %v293_v31 = vsel %vm147_vm1, %v249_v27, 0.0  ;;  %v260_v3 = vsel %vm147_vm1, %v238_v28, 0.0  ;;  %v248_v39 = vmul.f32 %v928_v40, %v928_v40 }
 0x130   :  { %v171_v32 = vpop.xlane.xlu1 %170  ;;  %v296_v44 = vsel %vm147_vm1, %v250_v38, 0.0 }
 0x131   :  { %v210_v33 = vmul.f32 %v818_v18, %v171_v32  ;;  %294 = vadd.xlane.f32.xlu0 %v293_v31  ;;  %261 = vadd.xlane.f32.xlu1 %v260_v3  ;;  %v963_v31 = vld [vmem:[%s1164_s4] ss:$0 sm:$0xff] }
 0x133   :  { %v921_v35 = vsub.f32 %v814_v10, %v210_v33  ;;  %v290_v10 = vsel %vm147_vm1, %v248_v39, 0.0 }
 0x135   :  { %v242_v4 = vmul.f32 %v921_v35, %v921_v35 }
 0x137   :  { %v272_v41 = vsel %vm147_vm1, %v242_v4, 0.0 }
 0x138   :  { %273 = vadd.xlane.f32.xlu2 %v272_v41 }
 0x139   :  { %297 = vadd.xlane.f32.xlu1 %v296_v44 }
 0x140   :  { %291 = vadd.xlane.f32.xlu2 %v290_v10 }
 0x17c   :  { %v265_v36 = vpop.xlane.xlu2 %264  ;;  %v253_v45 = vpop.xlane.xlu1 %252 }
 0x17d   :  { %v303_v37 = vmul.f32 %v265_v36, %v818_v18  ;;  %v299_v49 = vmul.f32 %v253_v45, %v818_v18 }
 0x17f   :  { %v319_v46 = vadd.f32 1e-06, %v303_v37  ;;  %v315_v50 = vadd.f32 1e-06, %v299_v49 }
 0x181   :  { %605 = vrsqrt.f32 %v319_v46  ;;  %vm377_vm5 = vweird.f32 %v319_v46  ;;  %vm337_vm7 = vweird.f32 %v315_v50 }
 0x182   :  { %607 = vrsqrt.f32 %v315_v50 }
 0x184   :  { %v289_v53 = vpop.xlane.xlu1 %288  ;;  %v277_v54 = vpop.xlane.xlu0 %276 }
 0x185   :  { %v311_v55 = vmul.f32 %v289_v53, %v818_v18  ;;  %v307_v56 = vmul.f32 %v277_v54, %v818_v18 }
 0x187   :  { %v606_v43 = vpop.eup %605  ;;  %v939_v58 = vadd.f32 1e-06, %v311_v55  ;;  %v941_v62 = vadd.f32 1e-06, %v307_v56 }
 0x188   :  { %v608_v63 = vpop.eup %607  ;;  %v372_v0 = vmul.f32 %v606_v43, %v319_v46  ;;  %vm378_vm3 = vweird.f32 %v606_v43 }
 0x189   :  { %v332_v1 = vmul.f32 %v608_v63, %v315_v50  ;;  %609 = vrsqrt.f32 %v939_v58  ;;  %vm338_vm4 = vweird.f32 %v608_v63  ;;  %vm379_vm6 = vmor %vm377_vm5, %vm378_vm3  ;;  %vm457_vm11 = vweird.f32 %v939_v58 }
 0x18a   :  { %v373_v2 = vmul.f32 %v606_v43, %v372_v0  ;;  %611 = vrsqrt.f32 %v941_v62  ;;  %vm339_vm8 = vmor %vm337_vm7, %vm338_vm4  ;;  %vm417_vm13 = vweird.f32 %v941_v62 }
 0x18b   :  { %v333_v6 = vmul.f32 %v608_v63, %v332_v1 }
 0x18c   :  { %v374_v7 = vmul.f32 0.5, %v373_v2  ;;  %v256_v51 = vpop.xlane.xlu2 %255  ;;  %v268_v52 = vpop.xlane.xlu0 %267 }
 0x18d   :  { %v334_v8 = vmul.f32 0.5, %v333_v6  ;;  %v300_v13 = vmul.f32 %v256_v51, %v818_v18  ;;  %v304_v14 = vmul.f32 %v268_v52, %v818_v18 }
 0x18e   :  { %v375_v15 = vsub.f32 1.5, %v374_v7 }
 0x18f   :  { %v610_v16 = vpop.eup %609  ;;  %v335_v17 = vsub.f32 1.5, %v334_v8  ;;  %v947_v61 = vadd.f32 1e-06, %v300_v13  ;;  %v949_v57 = vadd.f32 1e-06, %v304_v14 }
 0x190   :  { %v612_v19 = vpop.eup %611  ;;  %v376_v59 = vmul.f32 %v606_v43, %v375_v15  ;;  %v452_v20 = vmul.f32 %v610_v16, %v939_v58  ;;  %vm458_vm9 = vweird.f32 %v610_v16 }
 0x191   :  { %v336_v26 = vmul.f32 %v608_v63, %v335_v17  ;;  %v412_v27 = vmul.f32 %v612_v19, %v941_v62  ;;  %613 = vrsqrt.f32 %v947_v61  ;;  %vm418_vm10 = vweird.f32 %v612_v19  ;;  %vm459_vm12 = vmor %vm457_vm11, %vm458_vm9 }
 0x192   :  { %v380_v28 = vsel %vm379_vm6, %v606_v43, %v376_v59  ;;  %v453_v32 = vmul.f32 %v610_v16, %v452_v20  ;;  %615 = vrsqrt.f32 %v949_v57  ;;  %vm419_vm14 = vmor %vm417_vm13, %vm418_vm10  ;;  %vm347_vm15 = vweird.f32 %v947_v61 }
 0x193   :  { %v495_v3 = vmul.f32 %v380_v28, %v823_v23  ;;  %v340_v33 = vsel %vm339_vm8, %v608_v63, %v336_v26  ;;  %v413_v5 = vmul.f32 %v612_v19, %v412_v27  ;;  %vm387_vm4 = vweird.f32 %v949_v57 }
 0x194   :  { %v491_v38 = vmul.f32 %v340_v33, %v826_v24  ;;  %v454_v4 = vmul.f32 0.5, %v453_v32  ;;  %v280_v41 = vpop.xlane.xlu1 %279  ;;  %v259_v44 = vpop.xlane.xlu0 %258 }
 0x195   :  { %v515_v39 = vmul.f32 %v955_v21, %v495_v3  ;;  %v414_v10 = vmul.f32 0.5, %v413_v5  ;;  %v308_v36 = vmul.f32 %v280_v41, %v818_v18  ;;  %v301_v45 = vmul.f32 %v259_v44, %v818_v18 }
 0x196   :  { %v511_v37 = vmul.f32 %v955_v21, %v491_v38  ;;  %v455_v49 = vsub.f32 1.5, %v454_v4 }
 0x197   :  { %v614_v23 = vpop.eup %613  ;;  %v535_v46 = vadd.f32 %v963_v31, %v515_v39  ;;  %v415_v50 = vsub.f32 1.5, %v414_v10  ;;  %v972_v24 = vadd.f32 1e-06, %v308_v36  ;;  %v974_v53 = vadd.f32 1e-06, %v301_v45 }
 0x198   :  { %v616_v54 = vpop.eup %615  ;;  %v531_v55 = vadd.f32 %v963_v31, %v511_v37  ;;  %v456_v56 = vmul.f32 %v610_v16, %v455_v49  ;;  %v342_v43 = vmul.f32 %v614_v23, %v947_v61  ;;  %vm348_vm0 = vweird.f32 %v614_v23 }
 0x199   :  { %551 = vst.msk [vmem:[%s1165_s5 + $0x20] sm:$0xff] %vm147_vm1, %v535_v46  ;;  %v416_v63 = vmul.f32 %v612_v19, %v415_v50  ;;  %v382_v0 = vmul.f32 %v616_v54, %v949_v57  ;;  %617 = vrsqrt.f32 %v972_v24  ;;  %vm388_vm2 = vweird.f32 %v616_v54  ;;  %vm349_vm3 = vmor %vm347_vm15, %vm348_vm0 }
 0x19a   :  { %547 = vst.msk [vmem:[%s1165_s5] sm:$0xff] %vm147_vm1, %v531_v55  ;;  %v460_v58 = vsel %vm459_vm12, %v610_v16, %v456_v56  ;;  %v343_v1 = vmul.f32 %v614_v23, %v342_v43  ;;  %619 = vrsqrt.f32 %v974_v53  ;;  %vm389_vm5 = vmor %vm387_vm4, %vm388_vm2  ;;  %vm427_vm8 = vweird.f32 %v972_v24 }
 0x19b   :  { %v503_v2 = vmul.f32 %v460_v58, %v840_v34  ;;  %v420_v6 = vsel %vm419_vm14, %v612_v19, %v416_v63  ;;  %v383_v7 = vmul.f32 %v616_v54, %v382_v0  ;;  %v283_v62 = vpop.xlane.xlu2 %282  ;;  %vm357_vm10 = vweird.f32 %v974_v53 }
 0x19c   :  { %v499_v51 = vmul.f32 %v420_v6, %v837_v30  ;;  %v344_v52 = vmul.f32 0.5, %v343_v1  ;;  %v309_v8 = vmul.f32 %v283_v62, %v818_v18  ;;  %v271_v13 = vpop.xlane.xlu1 %270  ;;  %v286_v14 = vpop.xlane.xlu0 %285 }
 0x19d   :  { %v523_v15 = vmul.f32 %v955_v21, %v503_v2  ;;  %v384_v16 = vmul.f32 0.5, %v383_v7  ;;  %v305_v17 = vmul.f32 %v271_v13, %v818_v18  ;;  %v310_v59 = vmul.f32 %v286_v14, %v818_v18 }
 0x19e   :  { %v519_v34 = vmul.f32 %v955_v21, %v499_v51  ;;  %v345_v19 = vsub.f32 1.5, %v344_v52  ;;  %v1000_v20 = vadd.f32 1e-06, %v309_v8 }
 0x19f   :  { %v618_v30 = vpop.eup %617  ;;  %v543_v26 = vadd.f32 %v963_v31, %v523_v15  ;;  %v385_v27 = vsub.f32 1.5, %v384_v16  ;;  %v1003_v28 = vadd.f32 1e-06, %v305_v17  ;;  %v1007_v38 = vadd.f32 1e-06, %v310_v59 }
 0x1a0   :  { %v620_v32 = vpop.eup %619  ;;  %v539_v3 = vadd.f32 %v963_v31, %v519_v34  ;;  %v346_v33 = vmul.f32 %v614_v23, %v345_v19  ;;  %v422_v5 = vmul.f32 %v618_v30, %v972_v24  ;;  %621 = vrsqrt.f32 %v1000_v20 }
 0x1a1   :  { %559 = vst.msk [vmem:[%s1165_s5 + $0x60] sm:$0xff] %vm147_vm1, %v543_v26  ;;  %v386_v4 = vmul.f32 %v616_v54, %v385_v27  ;;  %v352_v41 = vmul.f32 %v620_v32, %v974_v53  ;;  %623 = vrsqrt.f32 %v1003_v28  ;;  %vm428_vm6 = vweird.f32 %v618_v30 }
 0x1a2   :  { %555 = vst.msk [vmem:[%s1165_s5 + $0x40] sm:$0xff] %vm147_vm1, %v539_v3  ;;  %v350_v44 = vsel %vm349_vm3, %v614_v23, %v346_v33  ;;  %v423_v39 = vmul.f32 %v618_v30, %v422_v5  ;;  %625 = vrsqrt.f32 %v1007_v38  ;;  %vm358_vm7 = vweird.f32 %v620_v32  ;;  %vm429_vm9 = vmor %vm427_vm8, %vm428_vm6 }
 0x1a3   :  { %v492_v61 = vmul.f32 %v350_v44, %v856_v48  ;;  %v390_v10 = vsel %vm389_vm5, %v616_v54, %v386_v4  ;;  %v353_v36 = vmul.f32 %v620_v32, %v352_v41  ;;  %vm359_vm11 = vmor %vm357_vm10, %vm358_vm7  ;;  %vm437_vm12 = vweird.f32 %v1000_v20 }
 0x1a4   :  { %v496_v57 = vmul.f32 %v390_v10, %v853_v47  ;;  %v424_v45 = vmul.f32 0.5, %v423_v39  ;;  %v262_v37 = vpop.xlane.xlu1 %261  ;;  %v295_v49 = vpop.xlane.xlu0 %294  ;;  %vm397_vm13 = vweird.f32 %v1003_v28  ;;  %vm447_vm4 = vweird.f32 %v1007_v38 }
 0x1a5   :  { %v512_v46 = vmul.f32 %v955_v21, %v492_v61  ;;  %v354_v50 = vmul.f32 0.5, %v353_v36  ;;  %v302_v23 = vmul.f32 %v262_v37, %v818_v18  ;;  %v313_v55 = vmul.f32 %v295_v49, %v818_v18 }
 0x1a6   :  { %v516_v56 = vmul.f32 %v955_v21, %v496_v57  ;;  %v425_v43 = vsub.f32 1.5, %v424_v45  ;;  %v1031_v48 = vpop.eup %621 }
 0x1a7   :  { %v532_v47 = vadd.f32 %v963_v31, %v512_v46  ;;  %v355_v54 = vsub.f32 1.5, %v354_v50  ;;  %v1034_v63 = vadd.f32 1e-06, %v302_v23  ;;  %v1036_v0 = vadd.f32 1e-06, %v313_v55  ;;  %v1038_v58 = vpop.eup %623 }
 0x1a8   :  { %v536_v1 = vadd.f32 %v963_v31, %v516_v56  ;;  %v426_v2 = vmul.f32 %v618_v30, %v425_v43  ;;  %v432_v6 = vmul.f32 %v1031_v48, %v1000_v20  ;;  %v392_v62 = vmul.f32 %v1038_v58, %v1003_v28  ;;  %v626_v51 = vpop.eup %625 }
 0x1a9   :  { %548 = vst.msk [vmem:[%s1165_s5 + $0x8] sm:$0xff] %vm147_vm1, %v532_v47  ;;  %v356_v7 = vmul.f32 %v620_v32, %v355_v54  ;;  %627 = vrsqrt.f32 %v1034_v63  ;;  %v442_v14 = vmul.f32 %v626_v51, %v1007_v38  ;;  %vm438_vm14 = vweird.f32 %v1031_v48 }
 0x1aa   :  { %552 = vst.msk [vmem:[%s1165_s5 + $0x28] sm:$0xff] %vm147_vm1, %v536_v1  ;;  %v430_v24 = vsel %vm429_vm9, %v618_v30, %v426_v2  ;;  %v433_v52 = vmul.f32 %v1031_v48, %v432_v6  ;;  %629 = vrsqrt.f32 %v1036_v0  ;;  %v393_v13 = vmul.f32 %v1038_v58, %v392_v62  ;;  %vm439_vm0 = vmor %vm437_vm12, %vm438_vm14 }
 0x1ab   :  { %v500_v53 = vmul.f32 %v430_v24, %v870_v60  ;;  %v360_v8 = vsel %vm359_vm11, %v620_v32, %v356_v7  ;;  %v274_v15 = vpop.xlane.xlu2 %273  ;;  %v443_v19 = vmul.f32 %v626_v51, %v442_v14  ;;  %vm398_vm15 = vweird.f32 %v1038_v58 }
 0x1ac   :  { %v493_v16 = vmul.f32 %v360_v8, %v867_v42  ;;  %v434_v17 = vmul.f32 0.5, %v433_v52  ;;  %v394_v34 = vmul.f32 0.5, %v393_v13  ;;  %v306_v30 = vmul.f32 %v274_v15, %v818_v18  ;;  %v298_v60 = vpop.xlane.xlu1 %297  ;;  %vm399_vm3 = vmor %vm397_vm13, %vm398_vm15 }
 0x1ad   :  { %v520_v59 = vmul.f32 %v955_v21, %v500_v53  ;;  %v444_v33 = vmul.f32 0.5, %v443_v19  ;;  %v314_v61 = vmul.f32 %v298_v60, %v818_v18  ;;  %vm448_vm2 = vweird.f32 %v626_v51 }
 0x1ae   :  { %v513_v26 = vmul.f32 %v955_v21, %v493_v16  ;;  %v435_v27 = vsub.f32 1.5, %v434_v17  ;;  %v395_v3 = vsub.f32 1.5, %v394_v34  ;;  %v1071_v5 = vadd.f32 1e-06, %v306_v30  ;;  %vm449_vm5 = vmor %vm447_vm4, %vm448_vm2 }
 0x1af   :  { %v628_v42 = vpop.eup %627  ;;  %v540_v32 = vadd.f32 %v963_v31, %v520_v59  ;;  %v445_v36 = vsub.f32 1.5, %v444_v33  ;;  %v330_v43 = vadd.f32 1e-06, %v314_v61  ;;  %vm367_vm8 = vweird.f32 %v1034_v63 }
 0x1b0   :  { %v630_v4 = vpop.eup %629  ;;  %v533_v41 = vadd.f32 %v963_v31, %v513_v26  ;;  %v436_v44 = vmul.f32 %v1031_v48, %v435_v27  ;;  %v362_v39 = vmul.f32 %v628_v42, %v1034_v63  ;;  %v396_v10 = vmul.f32 %v1038_v58, %v395_v3 }
 0x1b1   :  { %556 = vst.msk [vmem:[%s1165_s5 + $0x48] sm:$0xff] %vm147_vm1, %v540_v32  ;;  %v472_v57 = vmul.f32 %v630_v4, %v1036_v0  ;;  %631 = vrsqrt.f32 %v1071_v5  ;;  %v446_v46 = vmul.f32 %v626_v51, %v445_v36  ;;  %vm368_vm6 = vweird.f32 %v628_v42 }
 0x1b2   :  { %549 = vst.msk [vmem:[%s1165_s5 + $0x10] sm:$0xff] %vm147_vm1, %v533_v41  ;;  %v440_v45 = vsel %vm439_vm0, %v1031_v48, %v436_v44  ;;  %v363_v20 = vmul.f32 %v628_v42, %v362_v39  ;;  %v400_v49 = vsel %vm399_vm3, %v1038_v58, %v396_v10  ;;  %633 = vrsqrt.f32 %v330_v43  ;;  %vm369_vm9 = vmor %vm367_vm8, %vm368_vm6 }
 0x1b3   :  { %v501_v37 = vmul.f32 %v440_v45, %v885_v11  ;;  %v473_v50 = vmul.f32 %v630_v4, %v472_v57  ;;  %v292_v23 = vpop.xlane.xlu2 %291  ;;  %v497_v55 = vmul.f32 %v400_v49, %v888_v12  ;;  %v450_v38 = vsel %vm449_vm5, %v626_v51, %v446_v46 }
 0x1b4   :  { %v364_v56 = vmul.f32 0.5, %v363_v20  ;;  %v312_v28 = vmul.f32 %v292_v23, %v818_v18  ;;  %v502_v11 = vmul.f32 %v450_v38, %v882_v9  ;;  %vm478_vm7 = vweird.f32 %v630_v4 }
 0x1b5   :  { %v521_v48 = vmul.f32 %v955_v21, %v501_v37  ;;  %v474_v47 = vmul.f32 0.5, %v473_v50  ;;  %v517_v54 = vmul.f32 %v955_v21, %v497_v55  ;;  %vm477_vm10 = vweird.f32 %v1036_v0 }
 0x1b6   :  { %v365_v58 = vsub.f32 1.5, %v364_v56  ;;  %v328_v12 = vadd.f32 1e-06, %v312_v28  ;;  %v522_v18 = vmul.f32 %v955_v21, %v502_v11  ;;  %vm479_vm11 = vmor %vm477_vm10, %vm478_vm7  ;;  %vm407_vm13 = vweird.f32 %v1071_v5 }
 0x1b7   :  { %v541_v1 = vadd.f32 %v963_v31, %v521_v48  ;;  %v475_v2 = vsub.f32 1.5, %v474_v47  ;;  %v632_v6 = vpop.eup %631  ;;  %v537_v7 = vadd.f32 %v963_v31, %v517_v54  ;;  %vm487_vm0 = vweird.f32 %v330_v43 }
 0x1b8   :  { %v366_v62 = vmul.f32 %v628_v42, %v365_v58  ;;  %v402_v51 = vmul.f32 %v632_v6, %v1071_v5  ;;  %635 = vrsqrt.f32 %v328_v12  ;;  %v542_v63 = vadd.f32 %v963_v31, %v522_v18  ;;  %v634_v13 = vpop.eup %633 }
 0x1b9   :  { %557 = vst.msk [vmem:[%s1165_s5 + $0x50] sm:$0xff] %vm147_vm1, %v541_v1  ;;  %v476_v9 = vmul.f32 %v630_v4, %v475_v2  ;;  %v482_v16 = vmul.f32 %v634_v13, %v330_v43  ;;  %vm408_vm12 = vweird.f32 %v632_v6  ;;  %vm488_vm15 = vweird.f32 %v634_v13 }
 0x1ba   :  { %553 = vst.msk [vmem:[%s1165_s5 + $0x30] sm:$0xff] %vm147_vm1, %v537_v7  ;;  %v370_v24 = vsel %vm369_vm9, %v628_v42, %v366_v62  ;;  %v403_v8 = vmul.f32 %v632_v6, %v402_v51  ;;  %vm409_vm14 = vmor %vm407_vm13, %vm408_vm12  ;;  %vm467_vm4 = vweird.f32 %v328_v12 }
 0x1bb   :  { %v494_v52 = vmul.f32 %v370_v24, %v905_v25  ;;  %v480_v53 = vsel %vm479_vm11, %v630_v4, %v476_v9  ;;  %558 = vst.msk [vmem:[%s1165_s5 + $0x58] sm:$0xff] %vm147_vm1, %v542_v63  ;;  %v483_v19 = vmul.f32 %v634_v13, %v482_v16  ;;  %vm489_vm2 = vmor %vm487_vm0, %vm488_vm15 }
 0x1bc   :  { %v505_v0 = vmul.f32 %v480_v53, %v902_v22  ;;  %v404_v15 = vmul.f32 0.5, %v403_v8 }
 0x1bd   :  { %v514_v14 = vmul.f32 %v955_v21, %v494_v52  ;;  %v484_v26 = vmul.f32 0.5, %v483_v19 }
 0x1be   :  { %v525_v17 = vmul.f32 %v955_v21, %v505_v0  ;;  %v636_v59 = vpop.eup %635  ;;  %v405_v25 = vsub.f32 1.5, %v404_v15 }
 0x1bf   :  { %v534_v34 = vadd.f32 %v963_v31, %v514_v14  ;;  %v462_v60 = vmul.f32 %v636_v59, %v328_v12  ;;  %v485_v32 = vsub.f32 1.5, %v484_v26  ;;  %vm468_vm3 = vweird.f32 %v636_v59 }
 0x1c0   :  { %v545_v30 = vadd.f32 %v963_v31, %v525_v17  ;;  %v406_v22 = vmul.f32 %v632_v6, %v405_v25  ;;  %vm469_vm5 = vmor %vm467_vm4, %vm468_vm3 }
 0x1c1   :  { %550 = vst.msk [vmem:[%s1165_s5 + $0x18] sm:$0xff] %vm147_vm1, %v534_v34  ;;  %v463_v27 = vmul.f32 %v636_v59, %v462_v60  ;;  %v486_v4 = vmul.f32 %v634_v13, %v485_v32 }
 0x1c2   :  { %561 = vst.msk [vmem:[%s1165_s5 + $0x70] sm:$0xff] %vm147_vm1, %v545_v30  ;;  %v410_v42 = vsel %vm409_vm14, %v632_v6, %v406_v22 }
 0x1c3   :  { %v498_v3 = vmul.f32 %v410_v42, %v921_v35  ;;  %v464_v33 = vmul.f32 0.5, %v463_v27  ;;  %v490_v44 = vsel %vm489_vm2, %v634_v13, %v486_v4 }
 0x1c4   :  { %v506_v61 = vmul.f32 %v490_v44, %v913_v29 }
 0x1c5   :  { %v518_v41 = vmul.f32 %v955_v21, %v498_v3  ;;  %v465_v5 = vsub.f32 1.5, %v464_v33 }
 0x1c6   :  { %v526_v35 = vmul.f32 %v955_v21, %v506_v61 }
 0x1c7   :  { %v538_v39 = vadd.f32 %v963_v31, %v518_v41  ;;  %v466_v10 = vmul.f32 %v636_v59, %v465_v5 }
 0x1c8   :  { %v546_v45 = vadd.f32 %v963_v31, %v526_v35 }
 0x1c9   :  { %554 = vst.msk [vmem:[%s1165_s5 + $0x38] sm:$0xff] %vm147_vm1, %v538_v39  ;;  %v470_v36 = vsel %vm469_vm5, %v636_v59, %v466_v10 }
 0x1ca   :  { %v504_v57 = vmul.f32 %v470_v36, %v928_v40  ;;  %562 = vst.msk [vmem:[%s1165_s5 + $0x78] sm:$0xff] %vm147_vm1, %v546_v45 }
 0x1cc   :  { %v524_v20 = vmul.f32 %v955_v21, %v504_v57 }
 0x1ce   :  { %v544_v29 = vadd.f32 %v963_v31, %v524_v20 }
 0x1d0   :  { %560 = vst.msk [vmem:[%s1165_s5 + $0x68] sm:$0xff] %vm147_vm1, %v544_v29 }

</bundles_post_ra>
